<compile_context>
chip_gen: v7x
topology: tpu7x:2x2x1
jax: 0.10.0
libtpu: 0.0.40
codegen_flags: <defaults>
</compile_context>

<pallas_src>
import functools
import math

import jax
import jax.numpy as jnp
from jax.experimental import pallas as pl
from jax.experimental.pallas import tpu as pltpu


def _kmax_kernel(x_ref, o_ref, *, k: int):
    """Iterative top-k along the last (lane) axis.

    x_ref : (TR, L) block in VMEM
    o_ref : (TR, k) block in VMEM, values sorted descending per row
    """
    x = x_ref[...]                      # compute in the native dtype
    R, L = x.shape
    col = jax.lax.broadcasted_iota(jnp.int32, (R, L), 1)

    if jnp.issubdtype(x.dtype, jnp.floating):
        fill = jnp.asarray(-jnp.inf, dtype=x.dtype)
    else:
        fill = jnp.asarray(jnp.iinfo(x.dtype).min, dtype=x.dtype)

    # k is small and static -> unrolled extract-max-and-mask loop.
    # Each iter: 1 XLU max (+1 XLU argmax except on the last iter), VPU filler.
    for i in range(k):
        m = jnp.max(x, axis=-1, keepdims=True)          # (TR, 1) current max
        o_ref[:, i:i + 1] = m.astype(o_ref.dtype)        # stream column out
        if i + 1 < k:
            am = jnp.argmax(x, axis=-1)                  # first occurrence
            x = jnp.where(col == am[:, None], fill, x)   # remove exactly one


def _sublane_align(dtype) -> int:
    # f32 -> 8, bf16/f16 -> 16, int8/fp8 -> 32 (second-to-last tiling).
    itemsize = jnp.dtype(dtype).itemsize
    return max(8, 32 // itemsize)


def kmax_pooling(x, k: int):
    """JAX/Pallas equivalent of kmax_pooling(k).forward(x)."""
    lead = x.shape[:-1]
    L = x.shape[-1]
    assert k <= L, f"k={k} exceeds last-dim size {L} (torch.topk would error)"
    R = int(math.prod(lead)) if lead else 1
    x2 = x.reshape(R, L)                # glue reshape; hot path is in-kernel

    dtype = x.dtype
    itemsize = jnp.dtype(dtype).itemsize
    sub = _sublane_align(dtype)

    # Row tile: ~2 MiB per input block (pipeline-friendly, fits every gen's
    # scoped-VMEM budget when double-buffered), rounded to the sublane align.
    target_bytes = 2 * 1024 * 1024
    tr = max(sub, (target_bytes // max(1, L * itemsize)) // sub * sub)
    r_aligned = ((R + sub - 1) // sub) * sub
    tr = min(tr, r_aligned)

    # Pad rows so the grid covers the array exactly (padded rows sliced off).
    r_pad = ((R + tr - 1) // tr) * tr
    if r_pad != R:
        x2 = jnp.pad(x2, ((0, r_pad - R), (0, 0)))

    grid = (pl.cdiv(r_pad, tr),)

    cost = pl.CostEstimate(
        flops=int(3 * k * r_pad * L),
        transcendentals=0,
        bytes_accessed=int(r_pad * L * itemsize + r_pad * k * itemsize),
    )

    out = pl.pallas_call(
        functools.partial(_kmax_kernel, k=k),
        out_shape=jax.ShapeDtypeStruct((r_pad, k), dtype),
        grid=grid,
        in_specs=[pl.BlockSpec((tr, L), lambda r: (r, 0))],
        out_specs=pl.BlockSpec((tr, k), lambda r: (r, 0)),
        compiler_params=pltpu.CompilerParams(
            dimension_semantics=("parallel",),   # megacore sharding on v7x
            vmem_limit_bytes=32 * 1024 * 1024,   # explicit; tiles stay << this
        ),
        cost_estimate=cost,
    )(x2)

    if r_pad != R:
        out = out[:R]
    return out.reshape(1, -1)


if __name__ == "__main__":
    key = jax.random.PRNGKey(0)
    # Small shape consistent with VDCNN usage: (batch, channels, seq_len).
    B, C, Lseq = 2, 4, 16
    k = 3
    x = jax.random.normal(key, (B, C, Lseq), dtype=jnp.float32)

    y = kmax_pooling(x, k)
    y = jax.block_until_ready(y)

    # Reference check against jax.lax.top_k (same value semantics as torch.topk).
    ref = jax.lax.top_k(x, k)[0].reshape(1, -1)
    assert y.shape == (1, B * C * k), y.shape
    assert jnp.allclose(y, ref), "mismatch vs lax.top_k reference"

    # Second check: a larger, non-multiple-of-tile row count + duplicates.
    x2 = jax.random.normal(jax.random.PRNGKey(1), (3, 7, 130), dtype=jnp.float32)
    x2 = x2.at[:, :, 1].set(x2[:, :, 0])   # force duplicate maxima paths
    y2 = jax.block_until_ready(kmax_pooling(x2, 5))
    ref2 = jax.lax.top_k(x2, 5)[0].reshape(1, -1)
    assert jnp.allclose(y2, ref2), "mismatch vs lax.top_k reference (case 2)"

    print("KERNEL_OK")
</pallas_src>

<mosaic_0001>
module attributes {stable_mosaic.version = 11 : i64} {
  func.func @_kmax_kernel(%arg0: i32, %arg1: memref<8x16xf32, #tpu.memory_space<vmem>>, %arg2: memref<8x3xf32, #tpu.memory_space<vmem>>) attributes {dimension_semantics = [#tpu.dimension_semantics<parallel>], iteration_bounds = array<i64: 1>, scalar_prefetch = 0 : i64, scratch_operands = 0 : i64, tpu.core_type = #tpu.core_type<tc>, window_params = [{transform_indices = @transform_0, window_bounds = array<i64: 8, 16>}, {transform_indices = @transform_1, window_bounds = array<i64: 8, 3>}]} {
    %c0 = arith.constant 0 : index
    %c0_0 = arith.constant 0 : index
    %0 = vector.load %arg1[%c0, %c0_0] : memref<8x16xf32, #tpu.memory_space<vmem>>, vector<8x16xf32>
    %1 = tpu.iota {dimensions = array<i32: 1>} : vector<8x16xi32>
    %cst = arith.constant dense<0xFF800000> : vector<8xf32>
    %2 = vector.multi_reduction <maximumf>, %0, %cst [1] : vector<8x16xf32> to vector<8xf32>
    %3 = vector.shape_cast %2 : vector<8xf32> to vector<8x1xf32>
    %c0_1 = arith.constant 0 : index
    %c0_2 = arith.constant 0 : index
    %4 = vector.load %arg2[%c0_1, %c0_2] : memref<8x3xf32, #tpu.memory_space<vmem>>, vector<8x1xf32>
    tpu.vector_store %arg2[%c0_1, %c0_2], %3 {strides = array<i32>} : memref<8x3xf32, #tpu.memory_space<vmem>>, vector<8x1xf32>,
    %5 = tpu.reduce_index %0 {axis = 1 : i32, kind = #tpu.reduction_kind<arg_max>} : vector<8x16xf32> -> vector<8xi32>
    %6 = vector.shape_cast %5 : vector<8xi32> to vector<8x1xi32>
    %7 = vector.broadcast %6 : vector<8x1xi32> to vector<8x16xi32>
    %8 = arith.cmpi eq, %1, %7 : vector<8x16xi32>
    %cst_3 = arith.constant 0xFF800000 : f32
    %9 = vector.broadcast %cst_3 : f32 to vector<8x16xf32>
    %10 = arith.select %8, %9, %0 : vector<8x16xi1>, vector<8x16xf32>
    %cst_4 = arith.constant dense<0xFF800000> : vector<8xf32>
    %11 = vector.multi_reduction <maximumf>, %10, %cst_4 [1] : vector<8x16xf32> to vector<8xf32>
    %12 = vector.shape_cast %11 : vector<8xf32> to vector<8x1xf32>
    %c0_5 = arith.constant 0 : index
    %c1 = arith.constant 1 : index
    %13 = vector.load %arg2[%c0_5, %c1] : memref<8x3xf32, #tpu.memory_space<vmem>>, vector<8x1xf32>
    tpu.vector_store %arg2[%c0_5, %c1], %12 {strides = array<i32>} : memref<8x3xf32, #tpu.memory_space<vmem>>, vector<8x1xf32>,
    %14 = tpu.reduce_index %10 {axis = 1 : i32, kind = #tpu.reduction_kind<arg_max>} : vector<8x16xf32> -> vector<8xi32>
    %15 = vector.shape_cast %14 : vector<8xi32> to vector<8x1xi32>
    %16 = vector.broadcast %15 : vector<8x1xi32> to vector<8x16xi32>
    %17 = arith.cmpi eq, %1, %16 : vector<8x16xi32>
    %cst_6 = arith.constant 0xFF800000 : f32
    %18 = vector.broadcast %cst_6 : f32 to vector<8x16xf32>
    %19 = arith.select %17, %18, %10 : vector<8x16xi1>, vector<8x16xf32>
    %cst_7 = arith.constant dense<0xFF800000> : vector<8xf32>
    %20 = vector.multi_reduction <maximumf>, %19, %cst_7 [1] : vector<8x16xf32> to vector<8xf32>
    %21 = vector.shape_cast %20 : vector<8xf32> to vector<8x1xf32>
    %c0_8 = arith.constant 0 : index
    %c2 = arith.constant 2 : index
    %22 = vector.load %arg2[%c0_8, %c2] : memref<8x3xf32, #tpu.memory_space<vmem>>, vector<8x1xf32>
    tpu.vector_store %arg2[%c0_8, %c2], %21 {strides = array<i32>} : memref<8x3xf32, #tpu.memory_space<vmem>>, vector<8x1xf32>,
    return
  }
  func.func @transform_0(%arg0: i32) -> (i32, i32) {
    %c0_i32 = arith.constant 0 : i32
    %c0_i32_0 = arith.constant 0 : i32
    return %arg0, %c0_i32 : i32, i32
  }
  func.func @transform_1(%arg0: i32) -> (i32, i32) {
    %c0_i32 = arith.constant 0 : i32
    %c0_i32_0 = arith.constant 0 : i32
    return %arg0, %c0_i32 : i32, i32
  }
}

</mosaic_0001>

<bundles_post_ra>
// kernel: tpu_custom_call.1
= control target key start
LH: loop header
LB: loop body
LE: loop exit
PB: predicated region body
PF: predicated region fallthrough
CT: control target
= control target key end

     0   :  { %6 = vsyncpa [#allocation3], 0  ;;  %s77_s6 = smov [#allocation2]   ;;  %s112_s0 = inlined_call_operand.hbm [shape: f32[8,16], index: 0, kind: input, shape index: {}]   ;;  %s113_s1 = inlined_call_operand.vmem [shape: f32[8,3], index: 1, kind: output, shape index: {}]  }
   0x1   :  { %s13_s7 = sshll.u32 %s77_s6, 4  ;;  %s53_s10 = scalar_lea.hbm %s112_s0, 128  ;;  %s14_s7 = int_to_ptr.vmem [resolvable:$true] %s13_s7 }
   0x2   :  { %p54_p0 = scmp.ne.s32.totalorder %s112_s0, %s53_s10  ;;  %p57_p1 = scmp.lt.u32.totalorder %s53_s10, %s112_s0 }
   0x4   :  { %p59_p2 = pnand %p57_p1, %p54_p0 }
   0x6   :  { %62 = shalt.err (!%p59_p2)
}
   0x7   :  { %s63_s15 = scalar_lea.vmem %s14_s7, 128  ;;  %p68_p4 = scmp.lt.s32.totalorder %s14_s7, %s14_s7 }
   0x8   :  { %p64_p3 = scmp.ne.s32.totalorder %s14_s7, %s63_s15  ;;  %p69_p5 = scmp.lt.s32.totalorder %s63_s15, %s63_s15 }
   0xa   :  { %p70_p6 = por %p69_p5, %p68_p4 }
   0xc   :  { %p71_p7 = pnand %p70_p6, %p64_p3 }
   0xe   :  { %74 = shalt.err (!%p71_p7)
}
   0xf   :  { %16 = dma.hbm_to_vmem [thread:$0]  %s112_s0, 128, %s14_s7, [#allocation3]  }
  0x10   :  { %75 = dma.done.wait [#allocation3], 128  }
  0x11   :  { %76 = vsyncadd [#allocation3], 4294967168  ;;  %vm23_vm0 = vcmask 130048   ;;  %v20_v0 = vld [vmem:[#allocation2] sm:$0xff]  ;;  %v21_v2 = vlaneseq  ;;  %vm27_vm1 = vcmask 7168   ;;  %vm36_vm3 = vcmask 15368  }
  0x12   :  { %v24_v1 = vsel %vm23_vm0, %v20_v0, -inf  ;;  %vm45_vm5 = vcmask 23568  }
  0x13   :  { %29 = vmax.index.xlane.f32.xlu0 %v24_v1  ;;  %25 = vmax.xlane.f32.xlu1 %v24_v1  ;;  %v22_v3 = vand.u32 127, %v21_v2 }
  0xa0   :  { %v30_v4 = vpop.xlane.xlu0 %29  ;;  %v26_v5 = vpop.xlane.xlu1 %25 }
  0xa1   :  { %vm31_vm2 = vcmp.eq.s32.totalorder %v22_v3, %v30_v4  ;;  %28 = vst.msk [vmem:[%s113_s1] sm:$0xff] %vm27_vm1, %v26_v5 }
  0xa2   :  { %v32_v6 = vsel %vm31_vm2, -inf, %v20_v0 }
  0xa3   :  { %v33_v7 = vsel %vm23_vm0, %v32_v6, -inf }
  0xa4   :  { %34 = vmax.xlane.f32.xlu1 %v33_v7  ;;  %38 = vmax.index.xlane.f32.xlu0 %v33_v7 }
 0x131   :  { %v35_v8 = vpop.xlane.xlu1 %34  ;;  %v39_v9 = vpop.xlane.xlu0 %38 }
 0x132   :  { %37 = vst.msk [vmem:[%s113_s1] sm:$0xff] %vm36_vm3, %v35_v8  ;;  %vm40_vm4 = vcmp.eq.s32.totalorder %v22_v3, %v39_v9 }
 0x133   :  { %v41_v10 = vsel %vm40_vm4, -inf, %v32_v6 }
 0x134   :  { %v42_v11 = vsel %vm23_vm0, %v41_v10, -inf }
 0x135   :  { %43 = vmax.xlane.f32.xlu0 %v42_v11 }
 0x1c2   :  { %v44_v12 = vpop.xlane.xlu0 %43 }
 0x1c3   :  { %46 = vst.msk [vmem:[%s113_s1] sm:$0xff] %vm45_vm5, %v44_v12 }
 0x1c4   :  { %51 = vsyncpa [#allocation3], 1 }

</bundles_post_ra>
